<compile_context>
chip_gen: v7x
topology: tpu7x:2x2x1
jax: 0.10.0
libtpu: 0.0.40
codegen_flags: <defaults>
</compile_context>

<pallas_src>
import jax
import jax.numpy as jnp
from jax.experimental import pallas as pl
from jax.experimental.pallas import tpu as pltpu

KH = KW = 3  # 3x3 kernel, stride=1, padding=1


def conv_relu_kernel(w_ref, b_ref, x_ref, y_ref, ox_ref, oy_ref, xpad_ref):
    # w_ref:   (9,)  f32 SMEM (flattened 3x3 taps, row-major)
    # b_ref:   (1,)  f32 SMEM
    # x_ref / y_ref:   (NB, H, W) f32 VMEM (channel dim squeezed by BlockSpec)
    # ox_ref / oy_ref: (NB, H, W) f32 VMEM
    # xpad_ref:        (NB, H+2, W+2) f32 VMEM scratch (halo built in-kernel)
    NB, H, W = ox_ref.shape

    # Zero the halo once per grid step; both convs overwrite only the interior
    # below, so the 1-pixel border stays zero (Conv2d padding=1 semantics).
    xpad_ref[...] = jnp.zeros_like(xpad_ref)

    # Hoist scalar tap / bias reads once; reused by BOTH convs (shared weights).
    taps = [w_ref[k] for k in range(KH * KW)]
    bias = b_ref[0]

    def conv_one(inp_ref, out_ref):
        xpad_ref[:, 1:H + 1, 1:W + 1] = inp_ref[...]
        # 9 static-offset loads straight from the padded scratch ref.
        acc = taps[0] * xpad_ref[:, 0:H, 0:W]
        for k in range(1, KH * KW):
            di, dj = divmod(k, KW)
            acc = acc + taps[k] * xpad_ref[:, di:di + H, dj:dj + W]
        # Bias folded into the epilogue; ReLU on the VPU.
        out_ref[...] = jnp.maximum(acc + bias, 0.0).astype(out_ref.dtype)

    conv_one(x_ref, ox_ref)
    conv_one(y_ref, oy_ref)


def simpleconv_forward(x_nchw, y_nchw, weight, bias):
    """Shared Conv2d(1,1,3,padding=1)+ReLU applied to both inputs, one pallas_call."""
    N, C, H, W = x_nchw.shape
    assert C == 1 and y_nchw.shape == x_nchw.shape
    w = weight.reshape(-1).astype(jnp.float32)   # (9,) -> 1-D SMEM scalar taps
    b = bias.astype(jnp.float32)                 # (1,) -> SMEM

    # Split the batch across v7x's two TensorCores only when each per-core
    # block is big enough to amortize its own pipeline prologue / DMA warm-up;
    # otherwise a single grid step (always the right call on 1-TC v5e/v6e at
    # small sizes, and on v7x at this toy size).
    per_core_in_bytes = (N // 2) * H * W * 4 * 2   # x + y halves, f32
    G = 2 if (N % 2 == 0 and per_core_in_bytes >= (256 << 10)) else 1
    NB = N // G

    io_spec = pl.BlockSpec((NB, pl.Squeezed(), H, W), lambda g: (g, 0, 0, 0))
    smem_spec = pl.BlockSpec(memory_space=pltpu.MemorySpace.SMEM)

    x1, x2 = pl.pallas_call(
        conv_relu_kernel,
        out_shape=(jax.ShapeDtypeStruct((N, 1, H, W), jnp.float32),
                   jax.ShapeDtypeStruct((N, 1, H, W), jnp.float32)),
        grid_spec=pltpu.PrefetchScalarGridSpec(
            num_scalar_prefetch=0,
            grid=(G,),
            in_specs=[smem_spec, smem_spec, io_spec, io_spec],
            out_specs=(io_spec, io_spec),
            scratch_shapes=[pltpu.VMEM((NB, H + 2, W + 2), jnp.float32)],
        ),
        compiler_params=pltpu.CompilerParams(
            dimension_semantics=(("parallel",) if G == 2 else ("arbitrary",))),
    )(w, b, x_nchw.astype(jnp.float32), y_nchw.astype(jnp.float32))
    return x1, x2


class SimpleConvPallas:
    """Mirrors SimpleConv: shared Conv2d(1,1,3,padding=1)+ReLU applied to x and y."""

    def __init__(self, key):
        kw, kb = jax.random.split(key)
        fan_in = 1 * KH * KW
        bound = 1.0 / (fan_in ** 0.5)
        self.weight = jax.random.uniform(kw, (1, 1, KH, KW), jnp.float32,
                                         minval=-bound, maxval=bound)
        self.bias = jax.random.uniform(kb, (1,), jnp.float32,
                                       minval=-bound, maxval=bound)

    def __call__(self, x, y):
        return simpleconv_forward(x, y, self.weight, self.bias)


if __name__ == "__main__":
    key = jax.random.PRNGKey(0)
    k_model, k_x, k_y = jax.random.split(key, 3)

    model = SimpleConvPallas(k_model)

    N, C, H, W = 2, 1, 16, 16
    x = jax.random.normal(k_x, (N, C, H, W), jnp.float32)
    y = jax.random.normal(k_y, (N, C, H, W), jnp.float32)

    x1, x2 = model(x, y)
    jax.block_until_ready((x1, x2))

    # Sanity check against XLA's conv (same semantics as PyTorch Conv2d + ReLU).
    def ref(inp):
        o = jax.lax.conv_general_dilated(
            inp, model.weight, window_strides=(1, 1), padding=((1, 1), (1, 1)),
            dimension_numbers=("NCHW", "OIHW", "NCHW"))
        return jnp.maximum(o + model.bias.reshape(1, 1, 1, 1), 0.0)

    assert jnp.allclose(x1, ref(x), atol=1e-5)
    assert jnp.allclose(x2, ref(y), atol=1e-5)
    print("KERNEL_OK")
</pallas_src>

<mosaic_0001>
module attributes {stable_mosaic.version = 11 : i64} {
  func.func @conv_relu_kernel(%arg0: i32, %arg1: memref<9xf32, #tpu.memory_space<smem>>, %arg2: memref<1xf32, #tpu.memory_space<smem>>, %arg3: memref<2x1x16x16xf32, #tpu.memory_space<vmem>>, %arg4: memref<2x1x16x16xf32, #tpu.memory_space<vmem>>, %arg5: memref<2x1x16x16xf32, #tpu.memory_space<vmem>>, %arg6: memref<2x1x16x16xf32, #tpu.memory_space<vmem>>, %arg7: memref<2x18x18xf32, #tpu.memory_space<vmem>>) attributes {dimension_semantics = [#tpu.dimension_semantics<arbitrary>], iteration_bounds = array<i64: 1>, scalar_prefetch = 0 : i64, scratch_operands = 1 : i64, tpu.core_type = #tpu.core_type<tc>, window_params = [{transform_indices = @transform_0, window_bounds = array<i64: 9>}, {transform_indices = @transform_1, window_bounds = array<i64: 1>}, {transform_indices = @transform_2, window_bounds = array<i64: 2, 1, 16, 16>}, {transform_indices = @transform_3, window_bounds = array<i64: 2, 1, 16, 16>}, {transform_indices = @transform_4, window_bounds = array<i64: 2, 1, 16, 16>}, {transform_indices = @transform_5, window_bounds = array<i64: 2, 1, 16, 16>}]} {
    %cst = arith.constant 0.000000e+00 : f32
    %0 = vector.broadcast %cst : f32 to vector<2x18x18xf32>
    %c0 = arith.constant 0 : index
    %c0_0 = arith.constant 0 : index
    %c0_1 = arith.constant 0 : index
    %1 = vector.load %arg7[%c0, %c0_0, %c0_1] : memref<2x18x18xf32, #tpu.memory_space<vmem>>, vector<2x18x18xf32>
    tpu.vector_store %arg7[%c0, %c0_0, %c0_1], %0 {strides = array<i32>} : memref<2x18x18xf32, #tpu.memory_space<vmem>>, vector<2x18x18xf32>,
    %c0_2 = arith.constant 0 : index
    %2 = memref.load %arg1[%c0_2] : memref<9xf32, #tpu.memory_space<smem>>
    %c1 = arith.constant 1 : index
    %3 = memref.load %arg1[%c1] : memref<9xf32, #tpu.memory_space<smem>>
    %c2 = arith.constant 2 : index
    %4 = memref.load %arg1[%c2] : memref<9xf32, #tpu.memory_space<smem>>
    %c3 = arith.constant 3 : index
    %5 = memref.load %arg1[%c3] : memref<9xf32, #tpu.memory_space<smem>>
    %c4 = arith.constant 4 : index
    %6 = memref.load %arg1[%c4] : memref<9xf32, #tpu.memory_space<smem>>
    %c5 = arith.constant 5 : index
    %7 = memref.load %arg1[%c5] : memref<9xf32, #tpu.memory_space<smem>>
    %c6 = arith.constant 6 : index
    %8 = memref.load %arg1[%c6] : memref<9xf32, #tpu.memory_space<smem>>
    %c7 = arith.constant 7 : index
    %9 = memref.load %arg1[%c7] : memref<9xf32, #tpu.memory_space<smem>>
    %c8 = arith.constant 8 : index
    %10 = memref.load %arg1[%c8] : memref<9xf32, #tpu.memory_space<smem>>
    %c0_3 = arith.constant 0 : index
    %11 = memref.load %arg2[%c0_3] : memref<1xf32, #tpu.memory_space<smem>>
    %c0_4 = arith.constant 0 : index
    %c0_5 = arith.constant 0 : index
    %c0_6 = arith.constant 0 : index
    %c0_7 = arith.constant 0 : index
    %12 = vector.load %arg3[%c0_4, %c0_5, %c0_6, %c0_7] : memref<2x1x16x16xf32, #tpu.memory_space<vmem>>, vector<2x1x16x16xf32>
    %13 = vector.shape_cast %12 : vector<2x1x16x16xf32> to vector<2x16x16xf32>
    %c0_8 = arith.constant 0 : index
    %c1_9 = arith.constant 1 : index
    %c1_10 = arith.constant 1 : index
    %14 = vector.load %arg7[%c0_8, %c1_9, %c1_10] : memref<2x18x18xf32, #tpu.memory_space<vmem>>, vector<2x16x16xf32>
    tpu.vector_store %arg7[%c0_8, %c1_9, %c1_10], %13 {strides = array<i32>} : memref<2x18x18xf32, #tpu.memory_space<vmem>>, vector<2x16x16xf32>,
    %c0_11 = arith.constant 0 : index
    %c0_12 = arith.constant 0 : index
    %c0_13 = arith.constant 0 : index
    %15 = vector.load %arg7[%c0_11, %c0_12, %c0_13] : memref<2x18x18xf32, #tpu.memory_space<vmem>>, vector<2x16x16xf32>
    %16 = vector.broadcast %2 : f32 to vector<2x16x16xf32>
    %17 = arith.mulf %16, %15 : vector<2x16x16xf32>
    %c0_14 = arith.constant 0 : index
    %c0_15 = arith.constant 0 : index
    %c1_16 = arith.constant 1 : index
    %18 = vector.load %arg7[%c0_14, %c0_15, %c1_16] : memref<2x18x18xf32, #tpu.memory_space<vmem>>, vector<2x16x16xf32>
    %19 = vector.broadcast %3 : f32 to vector<2x16x16xf32>
    %20 = arith.mulf %19, %18 : vector<2x16x16xf32>
    %21 = arith.addf %17, %20 : vector<2x16x16xf32>
    %c0_17 = arith.constant 0 : index
    %c0_18 = arith.constant 0 : index
    %c2_19 = arith.constant 2 : index
    %22 = vector.load %arg7[%c0_17, %c0_18, %c2_19] : memref<2x18x18xf32, #tpu.memory_space<vmem>>, vector<2x16x16xf32>
    %23 = vector.broadcast %4 : f32 to vector<2x16x16xf32>
    %24 = arith.mulf %23, %22 : vector<2x16x16xf32>
    %25 = arith.addf %21, %24 : vector<2x16x16xf32>
    %c0_20 = arith.constant 0 : index
    %c1_21 = arith.constant 1 : index
    %c0_22 = arith.constant 0 : index
    %26 = vector.load %arg7[%c0_20, %c1_21, %c0_22] : memref<2x18x18xf32, #tpu.memory_space<vmem>>, vector<2x16x16xf32>
    %27 = vector.broadcast %5 : f32 to vector<2x16x16xf32>
    %28 = arith.mulf %27, %26 : vector<2x16x16xf32>
    %29 = arith.addf %25, %28 : vector<2x16x16xf32>
    %c0_23 = arith.constant 0 : index
    %c1_24 = arith.constant 1 : index
    %c1_25 = arith.constant 1 : index
    %30 = vector.load %arg7[%c0_23, %c1_24, %c1_25] : memref<2x18x18xf32, #tpu.memory_space<vmem>>, vector<2x16x16xf32>
    %31 = vector.broadcast %6 : f32 to vector<2x16x16xf32>
    %32 = arith.mulf %31, %30 : vector<2x16x16xf32>
    %33 = arith.addf %29, %32 : vector<2x16x16xf32>
    %c0_26 = arith.constant 0 : index
    %c1_27 = arith.constant 1 : index
    %c2_28 = arith.constant 2 : index
    %34 = vector.load %arg7[%c0_26, %c1_27, %c2_28] : memref<2x18x18xf32, #tpu.memory_space<vmem>>, vector<2x16x16xf32>
    %35 = vector.broadcast %7 : f32 to vector<2x16x16xf32>
    %36 = arith.mulf %35, %34 : vector<2x16x16xf32>
    %37 = arith.addf %33, %36 : vector<2x16x16xf32>
    %c0_29 = arith.constant 0 : index
    %c2_30 = arith.constant 2 : index
    %c0_31 = arith.constant 0 : index
    %38 = vector.load %arg7[%c0_29, %c2_30, %c0_31] : memref<2x18x18xf32, #tpu.memory_space<vmem>>, vector<2x16x16xf32>
    %39 = vector.broadcast %8 : f32 to vector<2x16x16xf32>
    %40 = arith.mulf %39, %38 : vector<2x16x16xf32>
    %41 = arith.addf %37, %40 : vector<2x16x16xf32>
    %c0_32 = arith.constant 0 : index
    %c2_33 = arith.constant 2 : index
    %c1_34 = arith.constant 1 : index
    %42 = vector.load %arg7[%c0_32, %c2_33, %c1_34] : memref<2x18x18xf32, #tpu.memory_space<vmem>>, vector<2x16x16xf32>
    %43 = vector.broadcast %9 : f32 to vector<2x16x16xf32>
    %44 = arith.mulf %43, %42 : vector<2x16x16xf32>
    %45 = arith.addf %41, %44 : vector<2x16x16xf32>
    %c0_35 = arith.constant 0 : index
    %c2_36 = arith.constant 2 : index
    %c2_37 = arith.constant 2 : index
    %46 = vector.load %arg7[%c0_35, %c2_36, %c2_37] : memref<2x18x18xf32, #tpu.memory_space<vmem>>, vector<2x16x16xf32>
    %47 = vector.broadcast %10 : f32 to vector<2x16x16xf32>
    %48 = arith.mulf %47, %46 : vector<2x16x16xf32>
    %49 = arith.addf %45, %48 : vector<2x16x16xf32>
    %50 = vector.broadcast %11 : f32 to vector<2x16x16xf32>
    %51 = arith.addf %49, %50 : vector<2x16x16xf32>
    %cst_38 = arith.constant 0.000000e+00 : f32
    %52 = vector.broadcast %cst_38 : f32 to vector<2x16x16xf32>
    %53 = arith.maximumf %51, %52 : vector<2x16x16xf32>
    %c0_39 = arith.constant 0 : index
    %c0_40 = arith.constant 0 : index
    %c0_41 = arith.constant 0 : index
    %c0_42 = arith.constant 0 : index
    %54 = vector.load %arg5[%c0_39, %c0_40, %c0_41, %c0_42] : memref<2x1x16x16xf32, #tpu.memory_space<vmem>>, vector<2x1x16x16xf32>
    %55 = vector.shape_cast %54 : vector<2x1x16x16xf32> to vector<2x16x16xf32>
    %56 = vector.shape_cast %53 : vector<2x16x16xf32> to vector<2x1x16x16xf32>
    tpu.vector_store %arg5[%c0_39, %c0_40, %c0_41, %c0_42], %56 {strides = array<i32>} : memref<2x1x16x16xf32, #tpu.memory_space<vmem>>, vector<2x1x16x16xf32>,
    %c0_43 = arith.constant 0 : index
    %c0_44 = arith.constant 0 : index
    %c0_45 = arith.constant 0 : index
    %c0_46 = arith.constant 0 : index
    %57 = vector.load %arg4[%c0_43, %c0_44, %c0_45, %c0_46] : memref<2x1x16x16xf32, #tpu.memory_space<vmem>>, vector<2x1x16x16xf32>
    %58 = vector.shape_cast %57 : vector<2x1x16x16xf32> to vector<2x16x16xf32>
    %c0_47 = arith.constant 0 : index
    %c1_48 = arith.constant 1 : index
    %c1_49 = arith.constant 1 : index
    %59 = vector.load %arg7[%c0_47, %c1_48, %c1_49] : memref<2x18x18xf32, #tpu.memory_space<vmem>>, vector<2x16x16xf32>
    tpu.vector_store %arg7[%c0_47, %c1_48, %c1_49], %58 {strides = array<i32>} : memref<2x18x18xf32, #tpu.memory_space<vmem>>, vector<2x16x16xf32>,
    %c0_50 = arith.constant 0 : index
    %c0_51 = arith.constant 0 : index
    %c0_52 = arith.constant 0 : index
    %60 = vector.load %arg7[%c0_50, %c0_51, %c0_52] : memref<2x18x18xf32, #tpu.memory_space<vmem>>, vector<2x16x16xf32>
    %61 = vector.broadcast %2 : f32 to vector<2x16x16xf32>
    %62 = arith.mulf %61, %60 : vector<2x16x16xf32>
    %c0_53 = arith.constant 0 : index
    %c0_54 = arith.constant 0 : index
    %c1_55 = arith.constant 1 : index
    %63 = vector.load %arg7[%c0_53, %c0_54, %c1_55] : memref<2x18x18xf32, #tpu.memory_space<vmem>>, vector<2x16x16xf32>
    %64 = vector.broadcast %3 : f32 to vector<2x16x16xf32>
    %65 = arith.mulf %64, %63 : vector<2x16x16xf32>
    %66 = arith.addf %62, %65 : vector<2x16x16xf32>
    %c0_56 = arith.constant 0 : index
    %c0_57 = arith.constant 0 : index
    %c2_58 = arith.constant 2 : index
    %67 = vector.load %arg7[%c0_56, %c0_57, %c2_58] : memref<2x18x18xf32, #tpu.memory_space<vmem>>, vector<2x16x16xf32>
    %68 = vector.broadcast %4 : f32 to vector<2x16x16xf32>
    %69 = arith.mulf %68, %67 : vector<2x16x16xf32>
    %70 = arith.addf %66, %69 : vector<2x16x16xf32>
    %c0_59 = arith.constant 0 : index
    %c1_60 = arith.constant 1 : index
    %c0_61 = arith.constant 0 : index
    %71 = vector.load %arg7[%c0_59, %c1_60, %c0_61] : memref<2x18x18xf32, #tpu.memory_space<vmem>>, vector<2x16x16xf32>
    %72 = vector.broadcast %5 : f32 to vector<2x16x16xf32>
    %73 = arith.mulf %72, %71 : vector<2x16x16xf32>
    %74 = arith.addf %70, %73 : vector<2x16x16xf32>
    %c0_62 = arith.constant 0 : index
    %c1_63 = arith.constant 1 : index
    %c1_64 = arith.constant 1 : index
    %75 = vector.load %arg7[%c0_62, %c1_63, %c1_64] : memref<2x18x18xf32, #tpu.memory_space<vmem>>, vector<2x16x16xf32>
    %76 = vector.broadcast %6 : f32 to vector<2x16x16xf32>
    %77 = arith.mulf %76, %75 : vector<2x16x16xf32>
    %78 = arith.addf %74, %77 : vector<2x16x16xf32>
    %c0_65 = arith.constant 0 : index
    %c1_66 = arith.constant 1 : index
    %c2_67 = arith.constant 2 : index
    %79 = vector.load %arg7[%c0_65, %c1_66, %c2_67] : memref<2x18x18xf32, #tpu.memory_space<vmem>>, vector<2x16x16xf32>
    %80 = vector.broadcast %7 : f32 to vector<2x16x16xf32>
    %81 = arith.mulf %80, %79 : vector<2x16x16xf32>
    %82 = arith.addf %78, %81 : vector<2x16x16xf32>
    %c0_68 = arith.constant 0 : index
    %c2_69 = arith.constant 2 : index
    %c0_70 = arith.constant 0 : index
    %83 = vector.load %arg7[%c0_68, %c2_69, %c0_70] : memref<2x18x18xf32, #tpu.memory_space<vmem>>, vector<2x16x16xf32>
    %84 = vector.broadcast %8 : f32 to vector<2x16x16xf32>
    %85 = arith.mulf %84, %83 : vector<2x16x16xf32>
    %86 = arith.addf %82, %85 : vector<2x16x16xf32>
    %c0_71 = arith.constant 0 : index
    %c2_72 = arith.constant 2 : index
    %c1_73 = arith.constant 1 : index
    %87 = vector.load %arg7[%c0_71, %c2_72, %c1_73] : memref<2x18x18xf32, #tpu.memory_space<vmem>>, vector<2x16x16xf32>
    %88 = vector.broadcast %9 : f32 to vector<2x16x16xf32>
    %89 = arith.mulf %88, %87 : vector<2x16x16xf32>
    %90 = arith.addf %86, %89 : vector<2x16x16xf32>
    %c0_74 = arith.constant 0 : index
    %c2_75 = arith.constant 2 : index
    %c2_76 = arith.constant 2 : index
    %91 = vector.load %arg7[%c0_74, %c2_75, %c2_76] : memref<2x18x18xf32, #tpu.memory_space<vmem>>, vector<2x16x16xf32>
    %92 = vector.broadcast %10 : f32 to vector<2x16x16xf32>
    %93 = arith.mulf %92, %91 : vector<2x16x16xf32>
    %94 = arith.addf %90, %93 : vector<2x16x16xf32>
    %95 = vector.broadcast %11 : f32 to vector<2x16x16xf32>
    %96 = arith.addf %94, %95 : vector<2x16x16xf32>
    %cst_77 = arith.constant 0.000000e+00 : f32
    %97 = vector.broadcast %cst_77 : f32 to vector<2x16x16xf32>
    %98 = arith.maximumf %96, %97 : vector<2x16x16xf32>
    %c0_78 = arith.constant 0 : index
    %c0_79 = arith.constant 0 : index
    %c0_80 = arith.constant 0 : index
    %c0_81 = arith.constant 0 : index
    %99 = vector.load %arg6[%c0_78, %c0_79, %c0_80, %c0_81] : memref<2x1x16x16xf32, #tpu.memory_space<vmem>>, vector<2x1x16x16xf32>
    %100 = vector.shape_cast %99 : vector<2x1x16x16xf32> to vector<2x16x16xf32>
    %101 = vector.shape_cast %98 : vector<2x16x16xf32> to vector<2x1x16x16xf32>
    tpu.vector_store %arg6[%c0_78, %c0_79, %c0_80, %c0_81], %101 {strides = array<i32>} : memref<2x1x16x16xf32, #tpu.memory_space<vmem>>, vector<2x1x16x16xf32>,
    return
  }
  func.func @transform_0(%arg0: i32) -> i32 {
    %c0_i32 = arith.constant 0 : i32
    %c0_i32_0 = arith.constant 0 : i32
    return %c0_i32 : i32
  }
  func.func @transform_1(%arg0: i32) -> i32 {
    %c0_i32 = arith.constant 0 : i32
    %c0_i32_0 = arith.constant 0 : i32
    return %c0_i32 : i32
  }
  func.func @transform_2(%arg0: i32) -> (i32, i32, i32, i32) {
    %c0_i32 = arith.constant 0 : i32
    %c0_i32_0 = arith.constant 0 : i32
    %c0_i32_1 = arith.constant 0 : i32
    %c0_i32_2 = arith.constant 0 : i32
    return %arg0, %c0_i32, %c0_i32_0, %c0_i32_1 : i32, i32, i32, i32
  }
  func.func @transform_3(%arg0: i32) -> (i32, i32, i32, i32) {
    %c0_i32 = arith.constant 0 : i32
    %c0_i32_0 = arith.constant 0 : i32
    %c0_i32_1 = arith.constant 0 : i32
    %c0_i32_2 = arith.constant 0 : i32
    return %arg0, %c0_i32, %c0_i32_0, %c0_i32_1 : i32, i32, i32, i32
  }
  func.func @transform_4(%arg0: i32) -> (i32, i32, i32, i32) {
    %c0_i32 = arith.constant 0 : i32
    %c0_i32_0 = arith.constant 0 : i32
    %c0_i32_1 = arith.constant 0 : i32
    %c0_i32_2 = arith.constant 0 : i32
    return %arg0, %c0_i32, %c0_i32_0, %c0_i32_1 : i32, i32, i32, i32
  }
  func.func @transform_5(%arg0: i32) -> (i32, i32, i32, i32) {
    %c0_i32 = arith.constant 0 : i32
    %c0_i32_0 = arith.constant 0 : i32
    %c0_i32_1 = arith.constant 0 : i32
    %c0_i32_2 = arith.constant 0 : i32
    return %arg0, %c0_i32, %c0_i32_0, %c0_i32_1 : i32, i32, i32, i32
  }
}

</mosaic_0001>

<bundles_post_ra>
// kernel: tpu_custom_call.1
= control target key start
LH: loop header
LB: loop body
LE: loop exit
PB: predicated region body
PF: predicated region fallthrough
CT: control target
= control target key end

     0   :  { %12 = vsyncpa [#allocation7], 0  ;;  %s1072_s0 = inlined_call_operand.vmem [shape: f32[9], index: 0, kind: input, shape index: {}]   ;;  %s1073_s1 = inlined_call_operand.<no memory space> [shape: f32[1], index: 1, kind: input, shape index: {}]   ;;  %s1074_s2 = inlined_call_operand.hbm [shape: f32[2,1,16,16], index: 2, kind: input, shape index: {}]   ;;  %s1075_s3 = inlined_call_operand.hbm [shape: f32[2,1,16,16], index: 3, kind: input, shape index: {}]   ;;  %s1076_s4 = inlined_call_operand.hbm [shape: f32[2,1,16,16], index: 4, kind: output, shape index: {0}]   ;;  %s1077_s5 = inlined_call_operand.hbm [shape: f32[2,1,16,16], index: 5, kind: output, shape index: {1}]  }
   0x1   :  { %13 = vsyncpa [#allocation5], 0 }
   0x2   :  { %14 = vsyncpa [#allocation10], 0 }
   0x3   :  { %15 = vsyncpa [#allocation6], 0 }
   0x4   :  { %16 = vsyncpa [#allocation13], 0  ;;  %s23_s20 = sshll.u32 %s1072_s0, 4  ;;  %s24_s20 = int_to_ptr.vmem [resolvable:$true] %s23_s20 }
   0x5   :  { %s571_s21 = scalar_lea.vmem %s24_s20, 16  ;;  %p576_p1 = scmp.lt.s32.totalorder %s24_s20, %s24_s20 }
   0x6   :  { %p572_p0 = scmp.ne.s32.totalorder %s24_s20, %s571_s21  ;;  %p577_p2 = scmp.lt.s32.totalorder %s571_s21, %s571_s21 }
   0x8   :  { %p578_p3 = por %p577_p2, %p576_p1 }
   0xa   :  { %p579_p4 = pnand %p578_p3, %p572_p0 }
   0xc   :  { %582 = shalt.err (!%p579_p4)
}
   0xd   :  { %s681_s22 = smov [#allocation4]   ;;  %s682_s23 = smov [#allocation8]  }
   0xe   :  { %26 = dma.vmem_to_smem %s24_s20, 16, %s681_s22, [#allocation7]  }
   0xf   :  { %s34_s24 = sshll.u32 %s682_s23, 4  ;;  %s583_s27 = scalar_lea.hbm %s1074_s2, 512  ;;  %s35_s24 = int_to_ptr.vmem [resolvable:$true] %s34_s24 }
  0x10   :  { %p584_p5 = scmp.ne.s32.totalorder %s1074_s2, %s583_s27  ;;  %p587_p6 = scmp.lt.u32.totalorder %s583_s27, %s1074_s2 }
  0x12   :  { %p589_p7 = pnand %p587_p6, %p584_p5 }
  0x14   :  { %592 = shalt.err (!%p589_p7)
}
  0x15   :  { %s593_s6 = scalar_lea.vmem %s35_s24, 512  ;;  %p598_p9 = scmp.lt.s32.totalorder %s35_s24, %s35_s24 }
  0x16   :  { %p594_p8 = scmp.ne.s32.totalorder %s35_s24, %s593_s6  ;;  %p599_p10 = scmp.lt.s32.totalorder %s593_s6, %s593_s6 }
  0x18   :  { %p600_p11 = por %p599_p10, %p598_p9 }
  0x1a   :  { %p601_p12 = pnand %p600_p11, %p594_p8 }
  0x1c   :  { %604 = shalt.err (!%p601_p12)
}
  0x1d   :  { %s683_s7 = smov 128   ;;  %s684_s8 = smov 8  }
  0x1e   :  { %40 = dma.hbm_to_vmem [thread:$0]  %s1074_s2, 512, %s35_s24, [#allocation5], %s683_s7, %s683_s7, %s684_s8  }
  0x1f   :  { %s685_s11 = smov [#allocation9]   ;;  %s605_s15 = scalar_lea.hbm %s1075_s3, 512 }
  0x20   :  { %s46_s12 = sshll.u32 %s685_s11, 4  ;;  %p606_p13 = scmp.ne.s32.totalorder %s1075_s3, %s605_s15  ;;  %s47_s12 = int_to_ptr.vmem [resolvable:$true] %s46_s12 }
  0x21   :  { %p609_p0 = scmp.lt.u32.totalorder %s605_s15, %s1075_s3 }
  0x23   :  { %p611_p1 = pnand %p609_p0, %p606_p13 }
  0x25   :  { %614 = shalt.err (!%p611_p1)
}
  0x26   :  { %s615_s20 = scalar_lea.vmem %s47_s12, 512  ;;  %p620_p3 = scmp.lt.s32.totalorder %s47_s12, %s47_s12 }
  0x27   :  { %p616_p2 = scmp.ne.s32.totalorder %s47_s12, %s615_s20  ;;  %p621_p4 = scmp.lt.s32.totalorder %s615_s20, %s615_s20 }
  0x29   :  { %p622_p5 = por %p621_p4, %p620_p3 }
  0x2b   :  { %p623_p6 = pnand %p622_p5, %p616_p2 }
  0x2d   :  { %626 = shalt.err (!%p623_p6)
}
  0x2e   :  { %52 = dma.hbm_to_vmem [thread:$0]  %s1075_s3, 512, %s47_s12, [#allocation10], %s683_s7, %s683_s7, %s684_s8  }
  0x2f   :  { %671 = dma.done.wait [#allocation7], 16  }
  0x30   :  { %672 = vsyncadd [#allocation7], 4294967280 }
  0x31   :  { %673 = dma.done.wait [#allocation5], 512  }
  0x32   :  { %674 = vsyncadd [#allocation5], 4294966784 }
  0x33   :  { %675 = dma.done.wait [#allocation10], 512  }
  0x34   :  { %676 = vsyncadd [#allocation10], 4294966784 }
  0x35   :  { %62 = sfence }
  0x36   :  { %v83_v0 = vld [vmem:[#allocation8 + $0x10] sm:$0xff]  ;;  %v81_v1 = vld [vmem:[#allocation8] sm:$0xff]  ;;  %vm63_vm0 = vcmask 146432   ;;  %s686_s22 = smov 1   ;;  %vm66_vm1 = vcmask 140288   ;;  %v84_v2 = vld [vmem:[#allocation8 + $0x18] sm:$0xff] }
  0x37   :  { %93 = vrot.lane.b32.xlu1 %v83_v0, %s686_s22  ;;  %89 = vrot.lane.b32.xlu0 %v81_v1, %s686_s22  ;;  %v82_v3 = vld [vmem:[#allocation8 + $0x8] sm:$0xff]  ;;  %v687_v4 = vmov 0.0   ;;  %v305_v6 = vld [vmem:[#allocation9] sm:$0xff]  ;;  %v308_v7 = vld [vmem:[#allocation9 + $0x18] sm:$0xff]  ;;  %vm101_vm2 = vcmask 138248   ;;  %s552_s3 = sld [smem:[#allocation4 + $0x1]] }
  0x38   :  { %68 = vst.msk [vmem:[#allocation2 + $0x18] sm:$0xff] %vm63_vm0, %v687_v4  ;;  %69 = vst.msk [vmem:[#allocation2 + $0x20] sm:$0xff] %vm63_vm0, %v687_v4  ;;  %v306_v5 = vld [vmem:[#allocation9 + $0x8] sm:$0xff]  ;;  %v307_v8 = vld [vmem:[#allocation9 + $0x10] sm:$0xff]  ;;  %s553_s23 = sld [smem:[#allocation4 + $0x2]]  ;;  %s688_s24 = smov 127  }
  0x39   :  { %64 = vst.msk [vmem:[#allocation2] sm:$0xff] %vm63_vm0, %v687_v4  ;;  %65 = vst.msk [vmem:[#allocation2 + $0x8] sm:$0xff] %vm63_vm0, %v687_v4  ;;  %s555_s25 = sld [smem:[#allocation4 + $0x4]]  ;;  %s689_s26 = smov 126   ;;  %vm300_vm3 = vcmask 130048  }
  0x3a   :  { %70 = vst.msk [vmem:[#allocation2 + $0x28] sm:$0x3] %vm66_vm1, %v687_v4  ;;  %67 = vst.msk [vmem:[#allocation2 + $0x10] sm:$0x3] %vm66_vm1, %v687_v4  ;;  %s556_s27 = sld [smem:[#allocation4 + $0x5]]  ;;  %s558_s28 = sld [smem:[#allocation4 + $0x7]] }
  0x3b   :  { %95 = vrot.lane.b32.xlu1 %v84_v2, %s686_s22  ;;  %91 = vrot.lane.b32.xlu0 %v82_v3, %s686_s22  ;;  %s559_s29 = sld [smem:[#allocation4 + $0x8]]  ;;  %s554_s30 = sld [smem:[#allocation4 + $0x3]] }
  0x3c   :  { %s71_s0 = sld [smem:[#allocation4]]  ;;  %s557_s6 = sld [smem:[#allocation4 + $0x6]] }
  0x3d   :  { %v759_v13 = vstv %s552_s3 }
  0x3e   :  { %v786_v30 = vstv %s553_s23 }
  0x3f   :  { %315 = vrot.lane.b32.xlu1 %v306_v5, %s686_s22  ;;  %313 = vrot.lane.b32.xlu0 %v305_v6, %s686_s22  ;;  %v810_v38 = vstv %s555_s25 }
  0x40   :  { %v824_v43 = vstv %s556_s27  ;;  %v838_v48 = vstv %s558_s28 }
  0x41   :  { %v852_v53 = vstv %s559_s29 }
  0x43   :  { %319 = vrot.lane.b32.xlu1 %v308_v7, %s686_s22  ;;  %317 = vrot.lane.b32.xlu0 %v307_v8, %s686_s22 }
  0xa9   :  { %v94_v9 = vpop.permute.xlu1 %93  ;;  %v90_v10 = vpop.permute.xlu0 %89 }
  0xaa   :  { %104 = vst.msk [vmem:[#allocation2 + $0x19] sm:$0xff] %vm101_vm2, %v94_v9  ;;  %102 = vst.msk [vmem:[#allocation2 + $0x1] sm:$0xff] %vm101_vm2, %v90_v10 }
  0xad   :  { %v96_v11 = vpop.permute.xlu1 %95  ;;  %v92_v12 = vpop.permute.xlu0 %91 }
  0xae   :  { %105 = vst.msk [vmem:[#allocation2 + $0x21] sm:$0xff] %vm101_vm2, %v96_v11  ;;  %103 = vst.msk [vmem:[#allocation2 + $0x9] sm:$0xff] %vm101_vm2, %v92_v12 }
  0xb1   :  { %v761_v14 = vld [vmem:[#allocation2] sm:$0xff]  ;;  %v763_v15 = vld [vmem:[#allocation2 + $0x18] sm:$0xff]  ;;  %v316_v16 = vpop.permute.xlu1 %315  ;;  %v314_v17 = vpop.permute.xlu0 %313 }
  0xb2   :  { %v116_v18 = vmul.f32 %v759_v13, %v761_v14  ;;  %v118_v19 = vmul.f32 %v759_v13, %v763_v15  ;;  %v770_v20 = vld [vmem:[#allocation2 + $0x1] sm:$0xff]  ;;  %v776_v23 = vld [vmem:[#allocation2 + $0x19] sm:$0xff]  ;;  %v141_v35 = vmul.f32 %v786_v30, %v761_v14  ;;  %v143_v37 = vmul.f32 %v786_v30, %v763_v15 }
  0xb3   :  { %v179_v40 = vmul.f32 %v810_v38, %v770_v20  ;;  %v181_v42 = vmul.f32 %v810_v38, %v776_v23  ;;  %v204_v45 = vmul.f32 %v824_v43, %v770_v20  ;;  %v206_v47 = vmul.f32 %v824_v43, %v776_v23 }
  0xb4   :  { %124 = vrot.lane.b32.xlu0 %v116_v18, %s688_s24 }
  0xb5   :  { %v772_v21 = vld [vmem:[#allocation2 + $0x8] sm:$0xff]  ;;  %v774_v22 = vld [vmem:[#allocation2 + $0x20] sm:$0xff]  ;;  %v320_v24 = vpop.permute.xlu1 %319  ;;  %v318_v25 = vpop.permute.xlu0 %317 }
  0xb6   :  { %v117_v26 = vmul.f32 %v759_v13, %v772_v21  ;;  %v780_v27 = vld [vmem:[#allocation2 + $0x9] sm:$0xff]  ;;  %v788_v31 = vld [vmem:[#allocation2 + $0x21] sm:$0xff]  ;;  %v119_v34 = vmul.f32 %v759_v13, %v774_v22  ;;  %v142_v36 = vmul.f32 %v786_v30, %v772_v21  ;;  %v144_v39 = vmul.f32 %v786_v30, %v774_v22 }
  0xb7   :  { %v782_v28 = vld [vmem:[#allocation2 + $0x2] sm:$0xff]  ;;  %v784_v29 = vld [vmem:[#allocation2 + $0xa] sm:$0xff]  ;;  %v790_v32 = vld [vmem:[#allocation2 + $0x1a] sm:$0xff]  ;;  %v180_v41 = vmul.f32 %v810_v38, %v780_v27  ;;  %v182_v44 = vmul.f32 %v810_v38, %v788_v31  ;;  %v205_v46 = vmul.f32 %v824_v43, %v780_v27  ;;  %v207_v49 = vmul.f32 %v824_v43, %v788_v31 }
  0xb8   :  { %326 = vst.msk [vmem:[#allocation2 + $0x9] sm:$0xff] %vm101_vm2, %v316_v16  ;;  %325 = vst.msk [vmem:[#allocation2 + $0x1] sm:$0xff] %vm101_vm2, %v314_v17  ;;  %v794_v33 = vld [vmem:[#allocation2 + $0x22] sm:$0xff]  ;;  %126 = vrot.lane.b32.xlu1 %v117_v26, %s688_s24  ;;  %128 = vrot.lane.b32.xlu0 %v118_v19, %s688_s24  ;;  %v242_v50 = vmul.f32 %v838_v48, %v782_v28  ;;  %v243_v51 = vmul.f32 %v838_v48, %v784_v29 }
  0xb9   :  { %328 = vst.msk [vmem:[#allocation2 + $0x21] sm:$0xff] %vm101_vm2, %v320_v24  ;;  %327 = vst.msk [vmem:[#allocation2 + $0x19] sm:$0xff] %vm101_vm2, %v318_v25  ;;  %v244_v52 = vmul.f32 %v838_v48, %v790_v32  ;;  %v245_v54 = vmul.f32 %v838_v48, %v794_v33  ;;  %v267_v55 = vmul.f32 %v852_v53, %v782_v28 }
  0xba   :  { %v268_v57 = vmul.f32 %v852_v53, %v784_v29  ;;  %v269_v58 = vmul.f32 %v852_v53, %v790_v32  ;;  %v270_v62 = vmul.f32 %v852_v53, %v794_v33 }
  0xbc   :  { %130 = vrot.lane.b32.xlu1 %v119_v34, %s688_s24  ;;  %149 = vrot.lane.b32.xlu0 %v141_v35, %s689_s26 }
  0xbf   :  { %v862_v56 = vld [vmem:[#allocation2 + $0x8] sm:$0xff]  ;;  %v872_v60 = vld [vmem:[#allocation2] sm:$0xff] }
  0xc0   :  { %151 = vrot.lane.b32.xlu1 %v142_v36, %s689_s26  ;;  %153 = vrot.lane.b32.xlu0 %v143_v37, %s689_s26  ;;  %v338_v59 = vmul.f32 %v862_v56, %v759_v13  ;;  %v874_v61 = vld [vmem:[#allocation2 + $0x20] sm:$0xff]  ;;  %v337_v63 = vmul.f32 %v872_v60, %v759_v13  ;;  %v884_v1 = vld [vmem:[#allocation2 + $0x18] sm:$0xff]  ;;  %v362_v3 = vmul.f32 %v862_v56, %v786_v30  ;;  %v906_v9 = vld [vmem:[#allocation2 + $0x9] sm:$0xff] }
  0xc1   :  { %v340_v0 = vmul.f32 %v874_v61, %v759_v13  ;;  %v339_v2 = vmul.f32 %v884_v1, %v759_v13  ;;  %v361_v4 = vmul.f32 %v872_v60, %v786_v30  ;;  %v364_v5 = vmul.f32 %v874_v61, %v786_v30  ;;  %v898_v6 = vld [vmem:[#allocation2 + $0x1] sm:$0xff]  ;;  %v908_v10 = vld [vmem:[#allocation2 + $0x19] sm:$0xff] }
  0xc2   :  { %v363_v7 = vmul.f32 %v884_v1, %v786_v30  ;;  %v397_v8 = vmul.f32 %v898_v6, %v810_v38  ;;  %v398_v11 = vmul.f32 %v906_v9, %v810_v38  ;;  %v399_v12 = vmul.f32 %v908_v10, %v810_v38  ;;  %v916_v13 = vld [vmem:[#allocation2 + $0x21] sm:$0xff]  ;;  %v938_v30 = vld [vmem:[#allocation2 + $0xa] sm:$0xff] }
  0xc3   :  { %v400_v16 = vmul.f32 %v916_v13, %v810_v38  ;;  %v421_v17 = vmul.f32 %v898_v6, %v824_v43  ;;  %v422_v18 = vmul.f32 %v906_v9, %v824_v43  ;;  %v423_v19 = vmul.f32 %v908_v10, %v824_v43  ;;  %v930_v24 = vld [vmem:[#allocation2 + $0x2] sm:$0xff]  ;;  %v940_v34 = vld [vmem:[#allocation2 + $0x1a] sm:$0xff] }
  0xc4   :  { %155 = vrot.lane.b32.xlu1 %v144_v39, %s689_s26  ;;  %187 = vrot.lane.b32.xlu0 %v179_v40, %s688_s24  ;;  %v424_v25 = vmul.f32 %v916_v13, %v824_v43  ;;  %v457_v26 = vmul.f32 %v930_v24, %v838_v48  ;;  %v458_v35 = vmul.f32 %v938_v30, %v838_v48  ;;  %v948_v37 = vld [vmem:[#allocation2 + $0x22] sm:$0xff] }
  0xc5   :  { %v459_v36 = vmul.f32 %v940_v34, %v838_v48  ;;  %v460_v38 = vmul.f32 %v948_v37, %v838_v48  ;;  %v481_v39 = vmul.f32 %v930_v24, %v852_v53  ;;  %v482_v40 = vmul.f32 %v938_v30, %v852_v53 }
  0xc6   :  { %v971_v48 = vstv %s554_s30 }
  0xc8   :  { %189 = vrot.lane.b32.xlu1 %v180_v41, %s688_s24  ;;  %191 = vrot.lane.b32.xlu0 %v181_v42, %s688_s24  ;;  %v483_v41 = vmul.f32 %v940_v34, %v852_v53  ;;  %v484_v42 = vmul.f32 %v948_v37, %v852_v53 }
  0xcc   :  { %193 = vrot.lane.b32.xlu1 %v182_v44, %s688_s24  ;;  %212 = vrot.lane.b32.xlu0 %v204_v45, %s689_s26  ;;  %v967_v44 = vstv %s71_s0 }
  0xcd   :  { %v113_v53 = vmul.f32 %v967_v44, %v763_v15  ;;  %v171_v15 = vmul.f32 %v971_v48, %v780_v27 }
  0xd0   :  { %214 = vrot.lane.b32.xlu1 %v205_v46, %s689_s26  ;;  %216 = vrot.lane.b32.xlu0 %v206_v47, %s689_s26  ;;  %v111_v47 = vmul.f32 %v967_v44, %v761_v14 }
  0xd4   :  { %218 = vrot.lane.b32.xlu1 %v207_v49, %s689_s26  ;;  %250 = vrot.lane.b32.xlu0 %v242_v50, %s688_s24 }
  0xd8   :  { %252 = vrot.lane.b32.xlu1 %v243_v51, %s688_s24  ;;  %254 = vrot.lane.b32.xlu0 %v244_v52, %s688_s24  ;;  %v112_v52 = vmul.f32 %v967_v44, %v772_v21 }
  0xdc   :  { %256 = vrot.lane.b32.xlu1 %v245_v54, %s688_s24  ;;  %275 = vrot.lane.b32.xlu0 %v267_v55, %s689_s26  ;;  %v170_v55 = vmul.f32 %v971_v48, %v770_v20 }
  0xe0   :  { %277 = vrot.lane.b32.xlu1 %v268_v57, %s689_s26  ;;  %279 = vrot.lane.b32.xlu0 %v269_v58, %s689_s26 }
  0xe4   :  { %281 = vrot.lane.b32.xlu1 %v270_v62, %s689_s26  ;;  %347 = vrot.lane.b32.xlu0 %v338_v59, %s688_s24 }
  0xe8   :  { %345 = vrot.lane.b32.xlu1 %v337_v63, %s688_s24  ;;  %351 = vrot.lane.b32.xlu0 %v340_v0, %s688_s24  ;;  %v172_v63 = vmul.f32 %v971_v48, %v776_v23  ;;  %v114_v0 = vmul.f32 %v967_v44, %v774_v22 }
  0xec   :  { %349 = vrot.lane.b32.xlu1 %v339_v2, %s688_s24  ;;  %371 = vrot.lane.b32.xlu0 %v362_v3, %s689_s26 }
  0xf0   :  { %369 = vrot.lane.b32.xlu1 %v361_v4, %s689_s26  ;;  %375 = vrot.lane.b32.xlu0 %v364_v5, %s689_s26 }
  0xf4   :  { %373 = vrot.lane.b32.xlu1 %v363_v7, %s689_s26  ;;  %405 = vrot.lane.b32.xlu0 %v397_v8, %s688_s24 }
  0xf8   :  { %407 = vrot.lane.b32.xlu1 %v398_v11, %s688_s24  ;;  %409 = vrot.lane.b32.xlu0 %v399_v12, %s688_s24  ;;  %v173_v11 = vmul.f32 %v971_v48, %v788_v31 }
  0xfc   :  { %411 = vrot.lane.b32.xlu1 %v400_v16, %s688_s24  ;;  %429 = vrot.lane.b32.xlu0 %v421_v17, %s689_s26  ;;  %v987_v17 = vstv %s557_s6 }
  0xfd   :  { %v233_v27 = vmul.f32 %v987_v17, %v782_v28  ;;  %v234_v31 = vmul.f32 %v987_v17, %v784_v29  ;;  %v236_v28 = vmul.f32 %v987_v17, %v794_v33  ;;  %v1000_v29 = vstv %s1073_s1  ;;  %s690_s1 = smov [#allocation11]  }
  0xfe   :  { %s522_s11 = sshll.u32 %s690_s1, 4  ;;  %s523_s11 = int_to_ptr.vmem [resolvable:$true] %s522_s11 }
  0xff   :  { %s627_s12 = scalar_lea.vmem %s523_s11, 512  ;;  %p632_p8 = scmp.lt.s32.totalorder %s523_s11, %s523_s11 }
 0x100   :  { %431 = vrot.lane.b32.xlu1 %v422_v18, %s689_s26  ;;  %433 = vrot.lane.b32.xlu0 %v423_v19, %s689_s26  ;;  %p628_p7 = scmp.ne.s32.totalorder %s523_s11, %s627_s12  ;;  %p633_p9 = scmp.lt.s32.totalorder %s627_s12, %s627_s12 }
 0x102   :  { %p634_p10 = por %p633_p9, %p632_p8 }
 0x104   :  { %435 = vrot.lane.b32.xlu1 %v424_v25, %s689_s26  ;;  %465 = vrot.lane.b32.xlu0 %v457_v26, %s688_s24  ;;  %p635_p11 = pnand %p634_p10, %p628_p7 }
 0x108   :  { %467 = vrot.lane.b32.xlu1 %v458_v35, %s688_s24  ;;  %469 = vrot.lane.b32.xlu0 %v459_v36, %s688_s24 }
 0x10c   :  { %471 = vrot.lane.b32.xlu1 %v460_v38, %s688_s24  ;;  %489 = vrot.lane.b32.xlu0 %v481_v39, %s689_s26 }
 0x110   :  { %491 = vrot.lane.b32.xlu1 %v482_v40, %s689_s26  ;;  %493 = vrot.lane.b32.xlu0 %v483_v41, %s689_s26 }
 0x114   :  { %495 = vrot.lane.b32.xlu1 %v484_v42, %s689_s26  ;;  %v235_v42 = vmul.f32 %v987_v17, %v790_v32 }
 0x126   :  { %v125_v43 = vpop.permute.xlu0 %124 }
 0x127   :  { %v136_v49 = vadd.f32 %v125_v43, %v111_v47 }
 0x12a   :  { %v127_v45 = vpop.permute.xlu1 %126  ;;  %v129_v46 = vpop.permute.xlu0 %128 }
 0x12b   :  { %v137_v57 = vadd.f32 %v127_v45, %v112_v52  ;;  %v138_v58 = vadd.f32 %v129_v46, %v113_v53 }
 0x12e   :  { %v131_v50 = vpop.permute.xlu1 %130  ;;  %v150_v51 = vpop.permute.xlu0 %149 }
 0x12f   :  { %v161_v54 = vadd.f32 %v150_v51, %v136_v49  ;;  %v139_v3 = vadd.f32 %v131_v50, %v114_v0 }
 0x131   :  { %v174_v59 = vadd.f32 %v170_v55, %v161_v54 }
 0x132   :  { %v152_v62 = vpop.permute.xlu1 %151  ;;  %v154_v14 = vpop.permute.xlu0 %153 }
 0x133   :  { %v162_v2 = vadd.f32 %v152_v62, %v137_v57  ;;  %v163_v21 = vadd.f32 %v154_v14, %v138_v58 }
 0x135   :  { %v175_v4 = vadd.f32 %v171_v15, %v162_v2  ;;  %v176_v20 = vadd.f32 %v172_v63, %v163_v21 }
 0x136   :  { %v156_v5 = vpop.permute.xlu1 %155  ;;  %v188_v7 = vpop.permute.xlu0 %187 }
 0x137   :  { %v164_v8 = vadd.f32 %v156_v5, %v139_v3  ;;  %v199_v22 = vadd.f32 %v188_v7, %v174_v59 }
 0x139   :  { %v177_v12 = vadd.f32 %v173_v11, %v164_v8 }
 0x13a   :  { %v190_v23 = vpop.permute.xlu1 %189  ;;  %v192_v16 = vpop.permute.xlu0 %191 }
 0x13b   :  { %v200_v26 = vadd.f32 %v190_v23, %v175_v4  ;;  %v201_v35 = vadd.f32 %v192_v16, %v176_v20 }
 0x13e   :  { %v194_v18 = vpop.permute.xlu1 %193  ;;  %v213_v19 = vpop.permute.xlu0 %212 }
 0x13f   :  { %v224_v25 = vadd.f32 %v213_v19, %v199_v22  ;;  %v202_v43 = vadd.f32 %v194_v18, %v177_v12  ;;  %v334_v22 = vmul.f32 %v862_v56, %v967_v44 }
 0x141   :  { %v237_v36 = vadd.f32 %v233_v27, %v224_v25 }
 0x142   :  { %v215_v38 = vpop.permute.xlu1 %214  ;;  %v217_v39 = vpop.permute.xlu0 %216 }
 0x143   :  { %v225_v40 = vadd.f32 %v215_v38, %v200_v26  ;;  %v226_v41 = vadd.f32 %v217_v39, %v201_v35 }
 0x145   :  { %v238_v45 = vadd.f32 %v234_v31, %v225_v40  ;;  %v239_v46 = vadd.f32 %v235_v42, %v226_v41 }
 0x146   :  { %v219_v47 = vpop.permute.xlu1 %218  ;;  %v251_v49 = vpop.permute.xlu0 %250 }
 0x147   :  { %v227_v50 = vadd.f32 %v219_v47, %v202_v43  ;;  %v262_v54 = vadd.f32 %v251_v49, %v237_v36 }
 0x149   :  { %v240_v51 = vadd.f32 %v236_v28, %v227_v50 }
 0x14a   :  { %v253_v52 = vpop.permute.xlu1 %252  ;;  %v255_v53 = vpop.permute.xlu0 %254 }
 0x14b   :  { %v263_v58 = vadd.f32 %v253_v52, %v238_v45  ;;  %v264_v59 = vadd.f32 %v255_v53, %v239_v46 }
 0x14e   :  { %v257_v55 = vpop.permute.xlu1 %256  ;;  %v276_v32 = vpop.permute.xlu0 %275 }
 0x14f   :  { %v287_v57 = vadd.f32 %v276_v32, %v262_v54  ;;  %v265_v21 = vadd.f32 %v257_v55, %v240_v51 }
 0x151   :  { %v292_v62 = vadd.f32 %v1000_v29, %v287_v57 }
 0x152   :  { %v278_v14 = vpop.permute.xlu1 %277  ;;  %v280_v63 = vpop.permute.xlu0 %279 }
 0x153   :  { %v296_v33 = vmax.f32 %v292_v62, 0.0  ;;  %v288_v0 = vadd.f32 %v278_v14, %v263_v58  ;;  %v289_v2 = vadd.f32 %v280_v63, %v264_v59 }
 0x155   :  { %301 = vst.msk [vmem:[#allocation11] sm:$0xff] %vm300_vm3, %v296_v33  ;;  %v293_v15 = vadd.f32 %v1000_v29, %v288_v0  ;;  %v294_v3 = vadd.f32 %v1000_v29, %v289_v2 }
 0x156   :  { %v282_v4 = vpop.permute.xlu1 %281  ;;  %v348_v20 = vpop.permute.xlu0 %347 }
 0x157   :  { %v297_v5 = vmax.f32 %v293_v15, 0.0  ;;  %v298_v7 = vmax.f32 %v294_v3, 0.0  ;;  %v290_v8 = vadd.f32 %v282_v4, %v265_v21  ;;  %v358_v18 = vadd.f32 %v348_v20, %v334_v22 }
 0x159   :  { %302 = vst.msk [vmem:[#allocation11 + $0x8] sm:$0xff] %vm300_vm3, %v297_v5  ;;  %303 = vst.msk [vmem:[#allocation11 + $0x10] sm:$0xff] %vm300_vm3, %v298_v7  ;;  %v295_v11 = vadd.f32 %v1000_v29, %v290_v8 }
 0x15a   :  { %v346_v12 = vpop.permute.xlu1 %345  ;;  %v352_v23 = vpop.permute.xlu0 %351 }
 0x15b   :  { %v299_v16 = vmax.f32 %v295_v11, 0.0 }
 0x15d   :  { %304 = vst.msk [vmem:[#allocation11 + $0x18] sm:$0xff] %vm300_vm3, %v299_v16 }
 0x15e   :  { %v350_v19 = vpop.permute.xlu1 %349  ;;  %v372_v25 = vpop.permute.xlu0 %371 }
 0x15f   :  { %638 = shalt.err (!%p635_p11)
}
 0x160   :  { %s639_s15 = scalar_lea.hbm %s1076_s4, 512 }
 0x161   :  { %p640_p12 = scmp.ne.s32.totalorder %s1076_s4, %s639_s15  ;;  %p643_p13 = scmp.lt.u32.totalorder %s639_s15, %s1076_s4 }
 0x163   :  { %p645_p0 = pnand %p643_p13, %p640_p12 }
 0x165   :  { %648 = shalt.err (!%p645_p0)
}
 0x166   :  { %528 = dma.vmem_to_hbm [thread:$0]  %s523_s11, 512, %s1076_s4, [#allocation6], %s683_s7, %s683_s7, %s684_s8   ;;  %v333_v56 = vmul.f32 %v872_v60, %v967_v44  ;;  %v336_v27 = vmul.f32 %v874_v61, %v967_v44  ;;  %v382_v26 = vadd.f32 %v372_v25, %v358_v18  ;;  %v390_v35 = vmul.f32 %v906_v9, %v971_v48  ;;  %v370_v41 = vpop.permute.xlu1 %369  ;;  %v376_v31 = vpop.permute.xlu0 %375 }
 0x167   :  { %v335_v40 = vmul.f32 %v884_v1, %v967_v44  ;;  %v389_v60 = vmul.f32 %v898_v6, %v971_v48  ;;  %v392_v61 = vmul.f32 %v916_v13, %v971_v48  ;;  %v391_v28 = vmul.f32 %v908_v10, %v971_v48  ;;  %s691_s4 = smov [#allocation12]  }
 0x168   :  { %v357_v36 = vadd.f32 %v346_v12, %v333_v56  ;;  %v360_v38 = vadd.f32 %v352_v23, %v336_v27  ;;  %v394_v39 = vadd.f32 %v390_v35, %v382_v26  ;;  %v449_v6 = vmul.f32 %v930_v24, %v987_v17  ;;  %s534_s21 = sshll.u32 %s691_s4, 4  ;;  %s535_s21 = int_to_ptr.vmem [resolvable:$true] %s534_s21 }
 0x169   :  { %v359_v45 = vadd.f32 %v350_v19, %v335_v40  ;;  %v450_v10 = vmul.f32 %v938_v30, %v987_v17  ;;  %v451_v48 = vmul.f32 %v940_v34, %v987_v17  ;;  %v452_v24 = vmul.f32 %v948_v37, %v987_v17  ;;  %s649_s22 = scalar_lea.vmem %s535_s21, 512  ;;  %p654_p2 = scmp.lt.s32.totalorder %s535_s21, %s535_s21 }
 0x16a   :  { %v381_v42 = vadd.f32 %v370_v41, %v357_v36  ;;  %v384_v43 = vadd.f32 %v376_v31, %v360_v38  ;;  %v374_v9 = vpop.permute.xlu1 %373  ;;  %v406_v49 = vpop.permute.xlu0 %405  ;;  %p650_p1 = scmp.ne.s32.totalorder %s535_s21, %s649_s22  ;;  %p655_p3 = scmp.lt.s32.totalorder %s649_s22, %s649_s22 }
 0x16b   :  { %v383_v50 = vadd.f32 %v374_v9, %v359_v45 }
 0x16c   :  { %v393_v46 = vadd.f32 %v389_v60, %v381_v42  ;;  %v396_v47 = vadd.f32 %v392_v61, %v384_v43  ;;  %p656_p4 = por %p655_p3, %p654_p2 }
 0x16d   :  { %v395_v1 = vadd.f32 %v391_v28, %v383_v50 }
 0x16e   :  { %v408_v44 = vpop.permute.xlu1 %407  ;;  %v410_v51 = vpop.permute.xlu0 %409  ;;  %v417_v52 = vadd.f32 %v406_v49, %v393_v46  ;;  %p657_p5 = pnand %p656_p4, %p650_p1 }
 0x16f   :  { %v418_v13 = vadd.f32 %v408_v44, %v394_v39  ;;  %v419_v32 = vadd.f32 %v410_v51, %v395_v1 }
 0x172   :  { %v412_v53 = vpop.permute.xlu1 %411  ;;  %v430_v54 = vpop.permute.xlu0 %429 }
 0x173   :  { %v441_v55 = vadd.f32 %v430_v54, %v417_v52  ;;  %v420_v63 = vadd.f32 %v412_v53, %v396_v47 }
 0x175   :  { %v453_v57 = vadd.f32 %v449_v6, %v441_v55 }
 0x176   :  { %v432_v58 = vpop.permute.xlu1 %431  ;;  %v434_v59 = vpop.permute.xlu0 %433 }
 0x177   :  { %v442_v62 = vadd.f32 %v432_v58, %v418_v13  ;;  %v443_v14 = vadd.f32 %v434_v59, %v419_v32 }
 0x179   :  { %v454_v33 = vadd.f32 %v450_v10, %v442_v62  ;;  %v455_v0 = vadd.f32 %v451_v48, %v443_v14 }
 0x17a   :  { %v436_v2 = vpop.permute.xlu1 %435  ;;  %v466_v21 = vpop.permute.xlu0 %465 }
 0x17b   :  { %v444_v15 = vadd.f32 %v436_v2, %v420_v63  ;;  %v477_v5 = vadd.f32 %v466_v21, %v453_v57 }
 0x17d   :  { %v456_v3 = vadd.f32 %v452_v24, %v444_v15 }
 0x17e   :  { %v468_v4 = vpop.permute.xlu1 %467  ;;  %v470_v20 = vpop.permute.xlu0 %469 }
 0x17f   :  { %v478_v30 = vadd.f32 %v468_v4, %v454_v33  ;;  %v479_v12 = vadd.f32 %v470_v20, %v455_v0 }
 0x182   :  { %v472_v7 = vpop.permute.xlu1 %471  ;;  %v490_v8 = vpop.permute.xlu0 %489 }
 0x183   :  { %v501_v11 = vadd.f32 %v490_v8, %v477_v5  ;;  %v480_v25 = vadd.f32 %v472_v7, %v456_v3 }
 0x185   :  { %v505_v34 = vadd.f32 %v501_v11, %v1000_v29 }
 0x186   :  { %v492_v23 = vpop.permute.xlu1 %491  ;;  %v494_v16 = vpop.permute.xlu0 %493 }
 0x187   :  { %v509_v22 = vmax.f32 %v505_v34, 0.0  ;;  %v502_v18 = vadd.f32 %v492_v23, %v478_v30  ;;  %v503_v19 = vadd.f32 %v494_v16, %v479_v12 }
 0x189   :  { %513 = vst.msk [vmem:[#allocation12] sm:$0xff] %vm300_vm3, %v509_v22  ;;  %v506_v37 = vadd.f32 %v502_v18, %v1000_v29  ;;  %v507_v17 = vadd.f32 %v503_v19, %v1000_v29 }
 0x18a   :  { %v496_v56 = vpop.permute.xlu1 %495 }
 0x18b   :  { %v510_v27 = vmax.f32 %v506_v37, 0.0  ;;  %v511_v26 = vmax.f32 %v507_v17, 0.0  ;;  %v504_v35 = vadd.f32 %v496_v56, %v480_v25 }
 0x18d   :  { %514 = vst.msk [vmem:[#allocation12 + $0x8] sm:$0xff] %vm300_vm3, %v510_v27  ;;  %515 = vst.msk [vmem:[#allocation12 + $0x10] sm:$0xff] %vm300_vm3, %v511_v26  ;;  %v508_v36 = vadd.f32 %v504_v35, %v1000_v29 }
 0x18f   :  { %v512_v38 = vmax.f32 %v508_v36, 0.0 }
 0x191   :  { %516 = vst.msk [vmem:[#allocation12 + $0x18] sm:$0xff] %vm300_vm3, %v512_v38 }
 0x192   :  { %660 = shalt.err (!%p657_p5)
}
 0x193   :  { %s661_s24 = scalar_lea.hbm %s1077_s5, 512 }
 0x194   :  { %p662_p6 = scmp.ne.s32.totalorder %s1077_s5, %s661_s24  ;;  %p665_p7 = scmp.lt.u32.totalorder %s661_s24, %s1077_s5 }
 0x196   :  { %p667_p8 = pnand %p665_p7, %p662_p6 }
 0x198   :  { %670 = shalt.err (!%p667_p8)
}
 0x199   :  { %540 = dma.vmem_to_hbm [thread:$0]  %s535_s21, 512, %s1077_s5, [#allocation13], %s683_s7, %s683_s7, %s684_s8  }
 0x19a   :  { %677 = dma.done.wait [#allocation6], 512  }
 0x19b   :  { %678 = vsyncadd [#allocation6], 4294966784 }
 0x19c   :  { %679 = dma.done.wait [#allocation13], 512  }
 0x19d   :  { %680 = vsyncadd [#allocation13], 4294966784 }
 0x19e   :  { %547 = vsyncpa [#allocation5], 1 }
 0x19f   :  { %548 = vsyncpa [#allocation10], 1 }
 0x1a0   :  { %549 = vsyncpa [#allocation6], 1 }
 0x1a1   :  { %550 = vsyncpa [#allocation13], 1 }
 0x1a2   :  { %551 = vsyncpa [#allocation7], 1 }

</bundles_post_ra>
